<compile_context>
chip_gen: v6e
topology: v6e:2x2x1
jax: 0.10.0
libtpu: 0.0.40
codegen_flags: <defaults>
</compile_context>

<pallas_src>
import math
import numpy as np
import jax
import jax.numpy as jnp
from jax import lax
from jax.experimental import pallas as pl
from jax.experimental.pallas import tpu as pltpu


def _round_up(v, m):
    return ((v + m - 1) // m) * m


# --------------------------------------------------------------------------
# Fused path: gather + multiply inside the kernel.
# --------------------------------------------------------------------------
def _make_fused_kernel(num_fields, vocab, embed_dim, pairs, tb, unroll_rows):
    """Kernel refs:
       xo_ref : SMEM (padded_batch * F,) int32  -- scalar-prefetched offset indices
       w_ref  : VMEM (F * vocab, D) f32         -- all embedding tables, flat
       out_ref: VMEM (tb, P * D) f32            -- lane-packed pair products
    """
    def per_row(xo_ref, w_ref, out_ref, base, r):
        row = base + r
        for p, (i, j) in enumerate(pairs):
            # left  = embeddings[j](x[:, i]) ; right = embeddings[i](x[:, j])
            li = j * vocab + xo_ref[row * num_fields + i]
            ri = i * vocab + xo_ref[row * num_fields + j]
            lv = w_ref[pl.ds(li, 1), :]            # (1, D) dynamic row select
            rv = w_ref[pl.ds(ri, 1), :]            # (1, D)
            out_ref[pl.ds(r, 1), pl.ds(p * embed_dim, embed_dim)] = lv * rv

    if unroll_rows:
        def kernel(xo_ref, w_ref, out_ref):
            base = pl.program_id(0) * tb
            for r in range(tb):                    # static unroll, static stores
                per_row(xo_ref, w_ref, out_ref, base, r)
    else:
        def kernel(xo_ref, w_ref, out_ref):
            base = pl.program_id(0) * tb

            def body(r, carry):
                per_row(xo_ref, w_ref, out_ref, base, r)
                return carry

            lax.fori_loop(0, tb, body, 0)
    return kernel


def _ffm_fused(x_off, weights, pairs, pd):
    batch, num_fields = x_off.shape
    _, vocab, embed_dim = weights.shape
    num_pairs = len(pairs)

    # --- batch tile: multiple of 8; >= 2 tiles when batch > 8 (v7x 2 TCs) ---
    if batch <= 8:
        tb = batch
    else:
        tb = max(8, min(32, ((1024 // max(1, num_pairs)) // 8) * 8 or 8))
        half = _round_up(-(-batch // 2), 8)
        tb = max(8, min(tb, half))
    padded_batch = _round_up(batch, tb)

    if padded_batch != batch:
        pad = jnp.zeros((padded_batch - batch, num_fields), dtype=jnp.int32)
        x_use = jnp.concatenate([x_off, pad], axis=0)
    else:
        x_use = x_off

    xo_flat = x_use.reshape(-1)                         # 1-D -> cheap SMEM padding
    w_flat = weights.reshape(num_fields * vocab, embed_dim)

    num_tiles = padded_batch // tb
    unroll_rows = (tb * num_pairs) <= 1024
    kernel = _make_fused_kernel(num_fields, vocab, embed_dim, tuple(pairs), tb,
                                unroll_rows)

    w_bytes = w_flat.size * 4
    out_tile_bytes = tb * pd * 4
    vmem_limit = int(min(32 << 20,
                         max(4 << 20, (2 * w_bytes + 2 * out_tile_bytes) * 1.5)))

    out = pl.pallas_call(
        kernel,
        out_shape=jax.ShapeDtypeStruct((padded_batch, pd), jnp.float32),
        grid_spec=pltpu.PrefetchScalarGridSpec(
            num_scalar_prefetch=1,
            grid=(num_tiles,),
            in_specs=[
                # whole flattened table, constant block index -> DMA'd once
                pl.BlockSpec((num_fields * vocab, embed_dim),
                             lambda b, xo: (0, 0)),
            ],
            out_specs=pl.BlockSpec((tb, pd), lambda b, xo: (b, 0)),
        ),
        compiler_params=pltpu.CompilerParams(
            dimension_semantics=("parallel",),
            vmem_limit_bytes=vmem_limit,
        ),
        cost_estimate=pl.CostEstimate(
            flops=padded_batch * pd,
            transcendentals=0,
            bytes_accessed=w_bytes + xo_flat.size * 4 + padded_batch * pd * 4,
        ),
    )(xo_flat, w_flat)
    return out[:batch]


# --------------------------------------------------------------------------
# Fallback path for tables too large for VMEM: one flat gather per side in the
# glue, lane-dense streaming multiply in the kernel.
# --------------------------------------------------------------------------
def _mul_kernel(left_ref, right_ref, out_ref):
    out_ref[...] = left_ref[...] * right_ref[...]


def _ffm_streaming(x_off, weights, pairs, pd):
    batch, num_fields = x_off.shape
    _, vocab, embed_dim = weights.shape

    if batch <= 8:
        tb = batch
    else:
        tb = max(8, ((4 << 20) // (pd * 4)) // 8 * 8)       # ~4 MiB tiles
        half = _round_up(-(-batch // 2), 8)                  # v7x: >= 2 tiles
        tb = max(8, min(tb, half))
    padded_batch = _round_up(batch, tb)

    if padded_batch != batch:
        pad = jnp.zeros((padded_batch - batch, num_fields), dtype=jnp.int32)
        x_use = jnp.concatenate([x_off, pad], axis=0)
    else:
        x_use = x_off

    w2 = weights.reshape(num_fields * vocab, embed_dim)
    i_idx = jnp.asarray([i for (i, _) in pairs], dtype=jnp.int32)
    j_idx = jnp.asarray([j for (_, j) in pairs], dtype=jnp.int32)
    # left[b, p]  = weights[j_p, x_off[b, i_p]]  (flat row = j_p*vocab + idx)
    left_idx = j_idx[None, :] * vocab + jnp.take(x_use, i_idx, axis=1)
    right_idx = i_idx[None, :] * vocab + jnp.take(x_use, j_idx, axis=1)
    left = jnp.take(w2, left_idx.reshape(-1), axis=0).reshape(padded_batch, pd)
    right = jnp.take(w2, right_idx.reshape(-1), axis=0).reshape(padded_batch, pd)

    num_tiles = padded_batch // tb
    tile_bytes = tb * pd * 4
    vmem_limit = int(min(32 << 20, max(4 << 20, 6 * tile_bytes * 1.25)))

    out = pl.pallas_call(
        _mul_kernel,
        out_shape=jax.ShapeDtypeStruct((padded_batch, pd), jnp.float32),
        grid=(num_tiles,),
        in_specs=[pl.BlockSpec((tb, pd), lambda b: (b, 0)),
                  pl.BlockSpec((tb, pd), lambda b: (b, 0))],
        out_specs=pl.BlockSpec((tb, pd), lambda b: (b, 0)),
        compiler_params=pltpu.CompilerParams(
            dimension_semantics=("parallel",),
            vmem_limit_bytes=vmem_limit,
        ),
        cost_estimate=pl.CostEstimate(
            flops=padded_batch * pd,
            transcendentals=0,
            bytes_accessed=3 * padded_batch * pd * 4,
        ),
    )(left, right)
    return out[:batch]


# --------------------------------------------------------------------------
# Public entry point.
# --------------------------------------------------------------------------
def ffm_forward(x, weights, offsets, *, max_table_vmem_bytes=4 << 20):
    """FFM pairwise-interaction forward.

    x:       int32 (batch, num_fields) raw per-field indices
    weights: float32 (num_fields, vocab, embed_dim) embedding tables
    offsets: int32 (num_fields,) cumulative field offsets
    returns: float32 (batch, num_pairs, embed_dim)
    """
    num_fields, _vocab, embed_dim = weights.shape
    batch = x.shape[0]
    pairs = [(i, j) for i in range(num_fields - 1) for j in range(i + 1, num_fields)]
    num_pairs = len(pairs)
    pd = num_pairs * embed_dim  # lane-packed (pair, embed) axis; keep >= 128 where possible

    weights = weights.astype(jnp.float32)
    x_off = x.astype(jnp.int32) + offsets[None, :].astype(jnp.int32)   # (B, F)

    table_bytes = num_fields * _vocab * embed_dim * 4
    if table_bytes <= max_table_vmem_bytes:
        out_flat = _ffm_fused(x_off, weights, pairs, pd)        # gather fused in kernel
    else:
        out_flat = _ffm_streaming(x_off, weights, pairs, pd)    # flat gather + multiply
    return out_flat.reshape(batch, num_pairs, embed_dim)


def _reference(x, weights, offsets):
    """Pure-JAX reference mirroring the PyTorch forward exactly."""
    num_fields = weights.shape[0]
    x_off = x + offsets[None, :]
    xs = [weights[t][x_off] for t in range(num_fields)]   # each (B, F, D)
    ix = []
    for i in range(num_fields - 1):
        for j in range(i + 1, num_fields):
            ix.append(xs[j][:, i] * xs[i][:, j])
    return jnp.stack(ix, axis=1)


if __name__ == "__main__":
    # --- deterministic setup (mirrors module __init__) ---
    field_dims = [3, 4, 5, 6]          # num_fields = 4, vocab = 18
    embed_dim = 32
    batch = 2

    num_fields = len(field_dims)
    vocab = int(sum(field_dims))
    offsets_np = np.array((0, *np.cumsum(field_dims)[:-1]), dtype=np.int32)
    offsets = jnp.asarray(offsets_np)

    key = jax.random.PRNGKey(0)
    k_w, k_x = jax.random.split(key)

    # xavier_uniform_ for each (vocab, embed_dim) table
    bound = math.sqrt(6.0 / (vocab + embed_dim))
    weights = jax.random.uniform(
        k_w, (num_fields, vocab, embed_dim),
        minval=-bound, maxval=bound, dtype=jnp.float32,
    )

    # per-field indices within each field's own vocabulary
    cols = []
    keys = jax.random.split(k_x, num_fields)
    for f, dim in enumerate(field_dims):
        cols.append(jax.random.randint(keys[f], (batch,), 0, dim, dtype=jnp.int32))
    x = jnp.stack(cols, axis=1)        # (batch, num_fields)

    ref = _reference(x, weights, offsets)

    # --- fused-gather path (primary) ---
    out = jax.block_until_ready(ffm_forward(x, weights, offsets))
    np.testing.assert_allclose(np.asarray(out), np.asarray(ref), rtol=1e-6, atol=1e-6)

    # --- large-table streaming fallback path ---
    out_fb = jax.block_until_ready(
        ffm_forward(x, weights, offsets, max_table_vmem_bytes=0))
    np.testing.assert_allclose(np.asarray(out_fb), np.asarray(ref), rtol=1e-6, atol=1e-6)

    print("KERNEL_OK")
</pallas_src>

<mosaic_0001>
module attributes {stable_mosaic.version = 11 : i64} {
  func.func @kernel(%arg0: i32, %arg1: memref<8xi32, #tpu.memory_space<smem>>, %arg2: memref<72x32xf32, #tpu.memory_space<vmem>>, %arg3: memref<2x192xf32, #tpu.memory_space<vmem>>) attributes {dimension_semantics = [#tpu.dimension_semantics<parallel>], iteration_bounds = array<i64: 1>, scalar_prefetch = 1 : i64, scratch_operands = 0 : i64, tpu.core_type = #tpu.core_type<tc>, window_params = [{pipeline_mode = #tpu.pipeline_mode<synchronous>, transform_indices = @transform_0, window_bounds = array<i64: 72, 32>}, {transform_indices = @transform_1, window_bounds = array<i64: 2, 192>}]} {
    %c2_i32 = arith.constant 2 : i32
    %0 = arith.muli %arg0, %c2_i32 : i32
    %c0_i32 = arith.constant 0 : i32
    %1 = arith.addi %0, %c0_i32 : i32
    %c4_i32 = arith.constant 4 : i32
    %2 = arith.muli %1, %c4_i32 : i32
    %c0_i32_0 = arith.constant 0 : i32
    %3 = arith.addi %2, %c0_i32_0 : i32
    %4 = arith.index_cast %3 : i32 to index
    %5 = memref.load %arg1[%4] : memref<8xi32, #tpu.memory_space<smem>>
    %c18_i32 = arith.constant 18 : i32
    %6 = arith.addi %c18_i32, %5 : i32
    %c4_i32_1 = arith.constant 4 : i32
    %7 = arith.muli %1, %c4_i32_1 : i32
    %c1_i32 = arith.constant 1 : i32
    %8 = arith.addi %7, %c1_i32 : i32
    %9 = arith.index_cast %8 : i32 to index
    %10 = memref.load %arg1[%9] : memref<8xi32, #tpu.memory_space<smem>>
    %c0_i32_2 = arith.constant 0 : i32
    %11 = arith.addi %c0_i32_2, %10 : i32
    %12 = arith.index_cast %6 : i32 to index
    %c0 = arith.constant 0 : index
    %13 = vector.load %arg2[%12, %c0] : memref<72x32xf32, #tpu.memory_space<vmem>>, vector<1x32xf32>
    %14 = arith.index_cast %11 : i32 to index
    %c0_3 = arith.constant 0 : index
    %15 = vector.load %arg2[%14, %c0_3] : memref<72x32xf32, #tpu.memory_space<vmem>>, vector<1x32xf32>
    %16 = arith.mulf %13, %15 : vector<1x32xf32>
    %c0_4 = arith.constant 0 : index
    %c0_5 = arith.constant 0 : index
    %17 = vector.load %arg3[%c0_4, %c0_5] : memref<2x192xf32, #tpu.memory_space<vmem>>, vector<1x32xf32>
    tpu.vector_store %arg3[%c0_4, %c0_5], %16 {strides = array<i32>} : memref<2x192xf32, #tpu.memory_space<vmem>>, vector<1x32xf32>,
    %c4_i32_6 = arith.constant 4 : i32
    %18 = arith.muli %1, %c4_i32_6 : i32
    %c0_i32_7 = arith.constant 0 : i32
    %19 = arith.addi %18, %c0_i32_7 : i32
    %20 = arith.index_cast %19 : i32 to index
    %21 = memref.load %arg1[%20] : memref<8xi32, #tpu.memory_space<smem>>
    %c36_i32 = arith.constant 36 : i32
    %22 = arith.addi %c36_i32, %21 : i32
    %c4_i32_8 = arith.constant 4 : i32
    %23 = arith.muli %1, %c4_i32_8 : i32
    %c2_i32_9 = arith.constant 2 : i32
    %24 = arith.addi %23, %c2_i32_9 : i32
    %25 = arith.index_cast %24 : i32 to index
    %26 = memref.load %arg1[%25] : memref<8xi32, #tpu.memory_space<smem>>
    %c0_i32_10 = arith.constant 0 : i32
    %27 = arith.addi %c0_i32_10, %26 : i32
    %28 = arith.index_cast %22 : i32 to index
    %c0_11 = arith.constant 0 : index
    %29 = vector.load %arg2[%28, %c0_11] : memref<72x32xf32, #tpu.memory_space<vmem>>, vector<1x32xf32>
    %30 = arith.index_cast %27 : i32 to index
    %c0_12 = arith.constant 0 : index
    %31 = vector.load %arg2[%30, %c0_12] : memref<72x32xf32, #tpu.memory_space<vmem>>, vector<1x32xf32>
    %32 = arith.mulf %29, %31 : vector<1x32xf32>
    %c0_13 = arith.constant 0 : index
    %c32 = arith.constant 32 : index
    %33 = vector.load %arg3[%c0_13, %c32] : memref<2x192xf32, #tpu.memory_space<vmem>>, vector<1x32xf32>
    tpu.vector_store %arg3[%c0_13, %c32], %32 {strides = array<i32>} : memref<2x192xf32, #tpu.memory_space<vmem>>, vector<1x32xf32>,
    %c4_i32_14 = arith.constant 4 : i32
    %34 = arith.muli %1, %c4_i32_14 : i32
    %c0_i32_15 = arith.constant 0 : i32
    %35 = arith.addi %34, %c0_i32_15 : i32
    %36 = arith.index_cast %35 : i32 to index
    %37 = memref.load %arg1[%36] : memref<8xi32, #tpu.memory_space<smem>>
    %c54_i32 = arith.constant 54 : i32
    %38 = arith.addi %c54_i32, %37 : i32
    %c4_i32_16 = arith.constant 4 : i32
    %39 = arith.muli %1, %c4_i32_16 : i32
    %c3_i32 = arith.constant 3 : i32
    %40 = arith.addi %39, %c3_i32 : i32
    %41 = arith.index_cast %40 : i32 to index
    %42 = memref.load %arg1[%41] : memref<8xi32, #tpu.memory_space<smem>>
    %c0_i32_17 = arith.constant 0 : i32
    %43 = arith.addi %c0_i32_17, %42 : i32
    %44 = arith.index_cast %38 : i32 to index
    %c0_18 = arith.constant 0 : index
    %45 = vector.load %arg2[%44, %c0_18] : memref<72x32xf32, #tpu.memory_space<vmem>>, vector<1x32xf32>
    %46 = arith.index_cast %43 : i32 to index
    %c0_19 = arith.constant 0 : index
    %47 = vector.load %arg2[%46, %c0_19] : memref<72x32xf32, #tpu.memory_space<vmem>>, vector<1x32xf32>
    %48 = arith.mulf %45, %47 : vector<1x32xf32>
    %c0_20 = arith.constant 0 : index
    %c64 = arith.constant 64 : index
    %49 = vector.load %arg3[%c0_20, %c64] : memref<2x192xf32, #tpu.memory_space<vmem>>, vector<1x32xf32>
    tpu.vector_store %arg3[%c0_20, %c64], %48 {strides = array<i32>} : memref<2x192xf32, #tpu.memory_space<vmem>>, vector<1x32xf32>,
    %c4_i32_21 = arith.constant 4 : i32
    %50 = arith.muli %1, %c4_i32_21 : i32
    %c1_i32_22 = arith.constant 1 : i32
    %51 = arith.addi %50, %c1_i32_22 : i32
    %52 = arith.index_cast %51 : i32 to index
    %53 = memref.load %arg1[%52] : memref<8xi32, #tpu.memory_space<smem>>
    %c36_i32_23 = arith.constant 36 : i32
    %54 = arith.addi %c36_i32_23, %53 : i32
    %c4_i32_24 = arith.constant 4 : i32
    %55 = arith.muli %1, %c4_i32_24 : i32
    %c2_i32_25 = arith.constant 2 : i32
    %56 = arith.addi %55, %c2_i32_25 : i32
    %57 = arith.index_cast %56 : i32 to index
    %58 = memref.load %arg1[%57] : memref<8xi32, #tpu.memory_space<smem>>
    %c18_i32_26 = arith.constant 18 : i32
    %59 = arith.addi %c18_i32_26, %58 : i32
    %60 = arith.index_cast %54 : i32 to index
    %c0_27 = arith.constant 0 : index
    %61 = vector.load %arg2[%60, %c0_27] : memref<72x32xf32, #tpu.memory_space<vmem>>, vector<1x32xf32>
    %62 = arith.index_cast %59 : i32 to index
    %c0_28 = arith.constant 0 : index
    %63 = vector.load %arg2[%62, %c0_28] : memref<72x32xf32, #tpu.memory_space<vmem>>, vector<1x32xf32>
    %64 = arith.mulf %61, %63 : vector<1x32xf32>
    %c0_29 = arith.constant 0 : index
    %c96 = arith.constant 96 : index
    %65 = vector.load %arg3[%c0_29, %c96] : memref<2x192xf32, #tpu.memory_space<vmem>>, vector<1x32xf32>
    tpu.vector_store %arg3[%c0_29, %c96], %64 {strides = array<i32>} : memref<2x192xf32, #tpu.memory_space<vmem>>, vector<1x32xf32>,
    %c4_i32_30 = arith.constant 4 : i32
    %66 = arith.muli %1, %c4_i32_30 : i32
    %c1_i32_31 = arith.constant 1 : i32
    %67 = arith.addi %66, %c1_i32_31 : i32
    %68 = arith.index_cast %67 : i32 to index
    %69 = memref.load %arg1[%68] : memref<8xi32, #tpu.memory_space<smem>>
    %c54_i32_32 = arith.constant 54 : i32
    %70 = arith.addi %c54_i32_32, %69 : i32
    %c4_i32_33 = arith.constant 4 : i32
    %71 = arith.muli %1, %c4_i32_33 : i32
    %c3_i32_34 = arith.constant 3 : i32
    %72 = arith.addi %71, %c3_i32_34 : i32
    %73 = arith.index_cast %72 : i32 to index
    %74 = memref.load %arg1[%73] : memref<8xi32, #tpu.memory_space<smem>>
    %c18_i32_35 = arith.constant 18 : i32
    %75 = arith.addi %c18_i32_35, %74 : i32
    %76 = arith.index_cast %70 : i32 to index
    %c0_36 = arith.constant 0 : index
    %77 = vector.load %arg2[%76, %c0_36] : memref<72x32xf32, #tpu.memory_space<vmem>>, vector<1x32xf32>
    %78 = arith.index_cast %75 : i32 to index
    %c0_37 = arith.constant 0 : index
    %79 = vector.load %arg2[%78, %c0_37] : memref<72x32xf32, #tpu.memory_space<vmem>>, vector<1x32xf32>
    %80 = arith.mulf %77, %79 : vector<1x32xf32>
    %c0_38 = arith.constant 0 : index
    %c128 = arith.constant 128 : index
    %81 = vector.load %arg3[%c0_38, %c128] : memref<2x192xf32, #tpu.memory_space<vmem>>, vector<1x32xf32>
    tpu.vector_store %arg3[%c0_38, %c128], %80 {strides = array<i32>} : memref<2x192xf32, #tpu.memory_space<vmem>>, vector<1x32xf32>,
    %c4_i32_39 = arith.constant 4 : i32
    %82 = arith.muli %1, %c4_i32_39 : i32
    %c2_i32_40 = arith.constant 2 : i32
    %83 = arith.addi %82, %c2_i32_40 : i32
    %84 = arith.index_cast %83 : i32 to index
    %85 = memref.load %arg1[%84] : memref<8xi32, #tpu.memory_space<smem>>
    %c54_i32_41 = arith.constant 54 : i32
    %86 = arith.addi %c54_i32_41, %85 : i32
    %c4_i32_42 = arith.constant 4 : i32
    %87 = arith.muli %1, %c4_i32_42 : i32
    %c3_i32_43 = arith.constant 3 : i32
    %88 = arith.addi %87, %c3_i32_43 : i32
    %89 = arith.index_cast %88 : i32 to index
    %90 = memref.load %arg1[%89] : memref<8xi32, #tpu.memory_space<smem>>
    %c36_i32_44 = arith.constant 36 : i32
    %91 = arith.addi %c36_i32_44, %90 : i32
    %92 = arith.index_cast %86 : i32 to index
    %c0_45 = arith.constant 0 : index
    %93 = vector.load %arg2[%92, %c0_45] : memref<72x32xf32, #tpu.memory_space<vmem>>, vector<1x32xf32>
    %94 = arith.index_cast %91 : i32 to index
    %c0_46 = arith.constant 0 : index
    %95 = vector.load %arg2[%94, %c0_46] : memref<72x32xf32, #tpu.memory_space<vmem>>, vector<1x32xf32>
    %96 = arith.mulf %93, %95 : vector<1x32xf32>
    %c0_47 = arith.constant 0 : index
    %c160 = arith.constant 160 : index
    %97 = vector.load %arg3[%c0_47, %c160] : memref<2x192xf32, #tpu.memory_space<vmem>>, vector<1x32xf32>
    tpu.vector_store %arg3[%c0_47, %c160], %96 {strides = array<i32>} : memref<2x192xf32, #tpu.memory_space<vmem>>, vector<1x32xf32>,
    %c1_i32_48 = arith.constant 1 : i32
    %98 = arith.addi %0, %c1_i32_48 : i32
    %c4_i32_49 = arith.constant 4 : i32
    %99 = arith.muli %98, %c4_i32_49 : i32
    %c0_i32_50 = arith.constant 0 : i32
    %100 = arith.addi %99, %c0_i32_50 : i32
    %101 = arith.index_cast %100 : i32 to index
    %102 = memref.load %arg1[%101] : memref<8xi32, #tpu.memory_space<smem>>
    %c18_i32_51 = arith.constant 18 : i32
    %103 = arith.addi %c18_i32_51, %102 : i32
    %c4_i32_52 = arith.constant 4 : i32
    %104 = arith.muli %98, %c4_i32_52 : i32
    %c1_i32_53 = arith.constant 1 : i32
    %105 = arith.addi %104, %c1_i32_53 : i32
    %106 = arith.index_cast %105 : i32 to index
    %107 = memref.load %arg1[%106] : memref<8xi32, #tpu.memory_space<smem>>
    %c0_i32_54 = arith.constant 0 : i32
    %108 = arith.addi %c0_i32_54, %107 : i32
    %109 = arith.index_cast %103 : i32 to index
    %c0_55 = arith.constant 0 : index
    %110 = vector.load %arg2[%109, %c0_55] : memref<72x32xf32, #tpu.memory_space<vmem>>, vector<1x32xf32>
    %111 = arith.index_cast %108 : i32 to index
    %c0_56 = arith.constant 0 : index
    %112 = vector.load %arg2[%111, %c0_56] : memref<72x32xf32, #tpu.memory_space<vmem>>, vector<1x32xf32>
    %113 = arith.mulf %110, %112 : vector<1x32xf32>
    %c1 = arith.constant 1 : index
    %c0_57 = arith.constant 0 : index
    %114 = vector.load %arg3[%c1, %c0_57] : memref<2x192xf32, #tpu.memory_space<vmem>>, vector<1x32xf32>
    tpu.vector_store %arg3[%c1, %c0_57], %113 {strides = array<i32>} : memref<2x192xf32, #tpu.memory_space<vmem>>, vector<1x32xf32>,
    %c4_i32_58 = arith.constant 4 : i32
    %115 = arith.muli %98, %c4_i32_58 : i32
    %c0_i32_59 = arith.constant 0 : i32
    %116 = arith.addi %115, %c0_i32_59 : i32
    %117 = arith.index_cast %116 : i32 to index
    %118 = memref.load %arg1[%117] : memref<8xi32, #tpu.memory_space<smem>>
    %c36_i32_60 = arith.constant 36 : i32
    %119 = arith.addi %c36_i32_60, %118 : i32
    %c4_i32_61 = arith.constant 4 : i32
    %120 = arith.muli %98, %c4_i32_61 : i32
    %c2_i32_62 = arith.constant 2 : i32
    %121 = arith.addi %120, %c2_i32_62 : i32
    %122 = arith.index_cast %121 : i32 to index
    %123 = memref.load %arg1[%122] : memref<8xi32, #tpu.memory_space<smem>>
    %c0_i32_63 = arith.constant 0 : i32
    %124 = arith.addi %c0_i32_63, %123 : i32
    %125 = arith.index_cast %119 : i32 to index
    %c0_64 = arith.constant 0 : index
    %126 = vector.load %arg2[%125, %c0_64] : memref<72x32xf32, #tpu.memory_space<vmem>>, vector<1x32xf32>
    %127 = arith.index_cast %124 : i32 to index
    %c0_65 = arith.constant 0 : index
    %128 = vector.load %arg2[%127, %c0_65] : memref<72x32xf32, #tpu.memory_space<vmem>>, vector<1x32xf32>
    %129 = arith.mulf %126, %128 : vector<1x32xf32>
    %c1_66 = arith.constant 1 : index
    %c32_67 = arith.constant 32 : index
    %130 = vector.load %arg3[%c1_66, %c32_67] : memref<2x192xf32, #tpu.memory_space<vmem>>, vector<1x32xf32>
    tpu.vector_store %arg3[%c1_66, %c32_67], %129 {strides = array<i32>} : memref<2x192xf32, #tpu.memory_space<vmem>>, vector<1x32xf32>,
    %c4_i32_68 = arith.constant 4 : i32
    %131 = arith.muli %98, %c4_i32_68 : i32
    %c0_i32_69 = arith.constant 0 : i32
    %132 = arith.addi %131, %c0_i32_69 : i32
    %133 = arith.index_cast %132 : i32 to index
    %134 = memref.load %arg1[%133] : memref<8xi32, #tpu.memory_space<smem>>
    %c54_i32_70 = arith.constant 54 : i32
    %135 = arith.addi %c54_i32_70, %134 : i32
    %c4_i32_71 = arith.constant 4 : i32
    %136 = arith.muli %98, %c4_i32_71 : i32
    %c3_i32_72 = arith.constant 3 : i32
    %137 = arith.addi %136, %c3_i32_72 : i32
    %138 = arith.index_cast %137 : i32 to index
    %139 = memref.load %arg1[%138] : memref<8xi32, #tpu.memory_space<smem>>
    %c0_i32_73 = arith.constant 0 : i32
    %140 = arith.addi %c0_i32_73, %139 : i32
    %141 = arith.index_cast %135 : i32 to index
    %c0_74 = arith.constant 0 : index
    %142 = vector.load %arg2[%141, %c0_74] : memref<72x32xf32, #tpu.memory_space<vmem>>, vector<1x32xf32>
    %143 = arith.index_cast %140 : i32 to index
    %c0_75 = arith.constant 0 : index
    %144 = vector.load %arg2[%143, %c0_75] : memref<72x32xf32, #tpu.memory_space<vmem>>, vector<1x32xf32>
    %145 = arith.mulf %142, %144 : vector<1x32xf32>
    %c1_76 = arith.constant 1 : index
    %c64_77 = arith.constant 64 : index
    %146 = vector.load %arg3[%c1_76, %c64_77] : memref<2x192xf32, #tpu.memory_space<vmem>>, vector<1x32xf32>
    tpu.vector_store %arg3[%c1_76, %c64_77], %145 {strides = array<i32>} : memref<2x192xf32, #tpu.memory_space<vmem>>, vector<1x32xf32>,
    %c4_i32_78 = arith.constant 4 : i32
    %147 = arith.muli %98, %c4_i32_78 : i32
    %c1_i32_79 = arith.constant 1 : i32
    %148 = arith.addi %147, %c1_i32_79 : i32
    %149 = arith.index_cast %148 : i32 to index
    %150 = memref.load %arg1[%149] : memref<8xi32, #tpu.memory_space<smem>>
    %c36_i32_80 = arith.constant 36 : i32
    %151 = arith.addi %c36_i32_80, %150 : i32
    %c4_i32_81 = arith.constant 4 : i32
    %152 = arith.muli %98, %c4_i32_81 : i32
    %c2_i32_82 = arith.constant 2 : i32
    %153 = arith.addi %152, %c2_i32_82 : i32
    %154 = arith.index_cast %153 : i32 to index
    %155 = memref.load %arg1[%154] : memref<8xi32, #tpu.memory_space<smem>>
    %c18_i32_83 = arith.constant 18 : i32
    %156 = arith.addi %c18_i32_83, %155 : i32
    %157 = arith.index_cast %151 : i32 to index
    %c0_84 = arith.constant 0 : index
    %158 = vector.load %arg2[%157, %c0_84] : memref<72x32xf32, #tpu.memory_space<vmem>>, vector<1x32xf32>
    %159 = arith.index_cast %156 : i32 to index
    %c0_85 = arith.constant 0 : index
    %160 = vector.load %arg2[%159, %c0_85] : memref<72x32xf32, #tpu.memory_space<vmem>>, vector<1x32xf32>
    %161 = arith.mulf %158, %160 : vector<1x32xf32>
    %c1_86 = arith.constant 1 : index
    %c96_87 = arith.constant 96 : index
    %162 = vector.load %arg3[%c1_86, %c96_87] : memref<2x192xf32, #tpu.memory_space<vmem>>, vector<1x32xf32>
    tpu.vector_store %arg3[%c1_86, %c96_87], %161 {strides = array<i32>} : memref<2x192xf32, #tpu.memory_space<vmem>>, vector<1x32xf32>,
    %c4_i32_88 = arith.constant 4 : i32
    %163 = arith.muli %98, %c4_i32_88 : i32
    %c1_i32_89 = arith.constant 1 : i32
    %164 = arith.addi %163, %c1_i32_89 : i32
    %165 = arith.index_cast %164 : i32 to index
    %166 = memref.load %arg1[%165] : memref<8xi32, #tpu.memory_space<smem>>
    %c54_i32_90 = arith.constant 54 : i32
    %167 = arith.addi %c54_i32_90, %166 : i32
    %c4_i32_91 = arith.constant 4 : i32
    %168 = arith.muli %98, %c4_i32_91 : i32
    %c3_i32_92 = arith.constant 3 : i32
    %169 = arith.addi %168, %c3_i32_92 : i32
    %170 = arith.index_cast %169 : i32 to index
    %171 = memref.load %arg1[%170] : memref<8xi32, #tpu.memory_space<smem>>
    %c18_i32_93 = arith.constant 18 : i32
    %172 = arith.addi %c18_i32_93, %171 : i32
    %173 = arith.index_cast %167 : i32 to index
    %c0_94 = arith.constant 0 : index
    %174 = vector.load %arg2[%173, %c0_94] : memref<72x32xf32, #tpu.memory_space<vmem>>, vector<1x32xf32>
    %175 = arith.index_cast %172 : i32 to index
    %c0_95 = arith.constant 0 : index
    %176 = vector.load %arg2[%175, %c0_95] : memref<72x32xf32, #tpu.memory_space<vmem>>, vector<1x32xf32>
    %177 = arith.mulf %174, %176 : vector<1x32xf32>
    %c1_96 = arith.constant 1 : index
    %c128_97 = arith.constant 128 : index
    %178 = vector.load %arg3[%c1_96, %c128_97] : memref<2x192xf32, #tpu.memory_space<vmem>>, vector<1x32xf32>
    tpu.vector_store %arg3[%c1_96, %c128_97], %177 {strides = array<i32>} : memref<2x192xf32, #tpu.memory_space<vmem>>, vector<1x32xf32>,
    %c4_i32_98 = arith.constant 4 : i32
    %179 = arith.muli %98, %c4_i32_98 : i32
    %c2_i32_99 = arith.constant 2 : i32
    %180 = arith.addi %179, %c2_i32_99 : i32
    %181 = arith.index_cast %180 : i32 to index
    %182 = memref.load %arg1[%181] : memref<8xi32, #tpu.memory_space<smem>>
    %c54_i32_100 = arith.constant 54 : i32
    %183 = arith.addi %c54_i32_100, %182 : i32
    %c4_i32_101 = arith.constant 4 : i32
    %184 = arith.muli %98, %c4_i32_101 : i32
    %c3_i32_102 = arith.constant 3 : i32
    %185 = arith.addi %184, %c3_i32_102 : i32
    %186 = arith.index_cast %185 : i32 to index
    %187 = memref.load %arg1[%186] : memref<8xi32, #tpu.memory_space<smem>>
    %c36_i32_103 = arith.constant 36 : i32
    %188 = arith.addi %c36_i32_103, %187 : i32
    %189 = arith.index_cast %183 : i32 to index
    %c0_104 = arith.constant 0 : index
    %190 = vector.load %arg2[%189, %c0_104] : memref<72x32xf32, #tpu.memory_space<vmem>>, vector<1x32xf32>
    %191 = arith.index_cast %188 : i32 to index
    %c0_105 = arith.constant 0 : index
    %192 = vector.load %arg2[%191, %c0_105] : memref<72x32xf32, #tpu.memory_space<vmem>>, vector<1x32xf32>
    %193 = arith.mulf %190, %192 : vector<1x32xf32>
    %c1_106 = arith.constant 1 : index
    %c160_107 = arith.constant 160 : index
    %194 = vector.load %arg3[%c1_106, %c160_107] : memref<2x192xf32, #tpu.memory_space<vmem>>, vector<1x32xf32>
    tpu.vector_store %arg3[%c1_106, %c160_107], %193 {strides = array<i32>} : memref<2x192xf32, #tpu.memory_space<vmem>>, vector<1x32xf32>,
    return
  }
  func.func @transform_0(%arg0: i32, %arg1: memref<8xi32, #tpu.memory_space<smem>>) -> (i32, i32) {
    %c0_i32 = arith.constant 0 : i32
    %c0_i32_0 = arith.constant 0 : i32
    %c0_i32_1 = arith.constant 0 : i32
    return %c0_i32, %c0_i32_0 : i32, i32
  }
  func.func @transform_1(%arg0: i32, %arg1: memref<8xi32, #tpu.memory_space<smem>>) -> (i32, i32) {
    %c0_i32 = arith.constant 0 : i32
    %c0_i32_0 = arith.constant 0 : i32
    return %arg0, %c0_i32 : i32, i32
  }
}

</mosaic_0001>

<bundles_post_ra>
// kernel: tpu_custom_call.1
= control target key start
LH: loop header
LB: loop body
LE: loop exit
PB: predicated region body
PF: predicated region fallthrough
CT: control target
= control target key end

     0   :  { %s446_s0 = inlined_call_operand.vmem [shape: s32[8], index: 0, kind: input, shape index: {}]   ;;  %s447_s1 = inlined_call_operand.vmem [shape: f32[72,32], index: 1, kind: input, shape index: {}]   ;;  %s448_s2 = inlined_call_operand.hbm [shape: f32[2,192], index: 2, kind: output, shape index: {}]  }
   0x1   :  { %s7_s11 = sshll.u32 %s446_s0, 4  ;;  %s8_s11 = int_to_ptr.vmem [resolvable:$true] %s7_s11 }
   0x2   :  { %s333_s12 = scalar_lea.vmem %s8_s11, 16  ;;  %p338_p1 = scmp.lt.s32.totalorder %s8_s11, %s8_s11 }
   0x3   :  { %p334_p0 = scmp.ne.s32.totalorder %s8_s11, %s333_s12  ;;  %p339_p2 = scmp.lt.s32.totalorder %s333_s12, %s333_s12 }
   0x5   :  { %p340_p3 = por %p339_p2, %p338_p1 }
   0x7   :  { %p341_p4 = pnand %p340_p3, %p334_p0 }
   0x9   :  { %344 = shalt.err (!%p341_p4)  }
   0xa   :  { %s369_s13 = smov [#allocation3]  }
   0xb   :  { %10 = dma.vmem_to_smem %s8_s11, 16, %s369_s13, [#allocation2] }
   0xc   :  { %365 = dma.done.wait [#allocation2], 16 }
   0xd   :  { %366 = vsyncadd [#allocation2], 4294967280 }
   0xe   :  { %12 = sfence }
   0xf   :  { %v42_v0 = vlaneseq  ;;  %s51_s14 = sld [smem:[#allocation3]]  ;;  %v370_v1 = vmov 1983009808  }
  0x10   :  { %v40_v2 = vunpack.c.l.s4 %v370_v1  ;;  %s292_s15 = sld [smem:[#allocation3 + $0x3]] }
  0x11   :  { %s290_s16 = sld [smem:[#allocation3 + $0x2]] }
  0x12   :  { %13 = vsyncpa [#allocation5], 0  ;;  %v41_v3 = vunpack.c.0.s8 %v40_v2  ;;  %v43_v4 = vshrl.u32 %v42_v0, 7  ;;  %s312_s0 = sld [smem:[#allocation3 + $0x4]]  ;;  %vm27_vm0 = vcmask 253952   ;;  %vm49_vm1 = vcmask 516352  }
  0x13   :  { %s313_s17 = sld [smem:[#allocation3 + $0x7]]  ;;  %vm71_vm2 = vcmask 778752   ;;  %vm93_vm3 = vcmask 1041152  }
  0x14   :  { %s310_s18 = sld [smem:[#allocation3 + $0x6]]  ;;  %v396_v5 = vsub.s32 %v41_v3, %v43_v4 }
  0x15   :  { %s252_s21 = scalar_lea.vmem %s447_s1, %s51_s14  ;;  %s294_s22 = sld [smem:[#allocation3 + $0x1]] }
  0x16   :  { %v293_v6 = vld [vmem:[%s252_s21 + $0x36] sm:$0x1]  ;;  %s57_s25 = scalar_lea.vmem %s447_s1, %s292_s15  ;;  %v291_v7 = vld [vmem:[%s252_s21 + $0x24] sm:$0x1]  ;;  %s401_s26 = sld [smem:[#allocation3 + $0x5]] }
  0x17   :  { %v58_v8 = vld [vmem:[%s57_s25] sm:$0x1]  ;;  %s35_s29 = scalar_lea.vmem %s447_s1, %s290_s16  ;;  %v305_v11 = vld [vmem:[%s57_s25 + $0x24] sm:$0x1]  ;;  %v289_v12 = vld [vmem:[%s252_s21 + $0x12] sm:$0x1] }
  0x18   :  { %v59_v9 = vmul.f32 %v293_v6, %v58_v8  ;;  %v36_v10 = vld [vmem:[%s35_s29] sm:$0x1]  ;;  %s273_s4 = scalar_lea.vmem %s447_s1, %s312_s0  ;;  %v304_v16 = vld [vmem:[%s35_s29 + $0x36] sm:$0x1]  ;;  %v297_v19 = vld [vmem:[%s35_s29 + $0x12] sm:$0x1] }
  0x19   :  { %v37_v13 = vmul.f32 %v291_v7, %v36_v10  ;;  %v314_v14 = vld [vmem:[%s273_s4 + $0x36] sm:$0x1]  ;;  %s412_s7 = scalar_lea.vmem %s447_s1, %s313_s17  ;;  %v311_v15 = vld [vmem:[%s273_s4 + $0x24] sm:$0x1]  ;;  %v301_v20 = vld [vmem:[%s57_s25 + $0x12] sm:$0x1]  ;;  %v113_v27 = vmul.f32 %v305_v11, %v304_v16 }
  0x1a   :  { %v67_v17 = vrot.slane %v59_v9, %v396_v5  ;;  %v166_v18 = vld [vmem:[%s412_s7] sm:$0x1]  ;;  %s144_s10 = scalar_lea.vmem %s447_s1, %s310_s18  ;;  %v326_v24 = vld [vmem:[%s412_s7 + $0x24] sm:$0x1]  ;;  %v308_v25 = vld [vmem:[%s273_s4 + $0x12] sm:$0x1] }
  0x1b   :  { %v45_v21 = vrot.slane %v37_v13, %v396_v5  ;;  %v167_v22 = vmul.f32 %v314_v14, %v166_v18  ;;  %v145_v23 = vld [vmem:[%s144_s10] sm:$0x1]  ;;  %s255_s13 = scalar_lea.vmem %s447_s1, %s294_s22  ;;  %s371_s14 = smov 64   ;;  %v325_v33 = vld [vmem:[%s144_s10 + $0x36] sm:$0x1]  ;;  %v121_v44 = vrot.slane %v113_v27, %v396_v5 }
  0x1c   :  { %68 = vrot.lane.b32.xlu1 %v67_v17, %s371_s14  ;;  %v146_v26 = vmul.f32 %v311_v15, %v145_v23  ;;  %v296_v28 = vld [vmem:[%s255_s13 + $0x24] sm:$0x1]  ;;  %s276_s0 = scalar_lea.vmem %s447_s1, %s401_s26  ;;  %v25_v29 = vld [vmem:[%s255_s13] sm:$0x1]  ;;  %v300_v30 = vld [vmem:[%s255_s13 + $0x36] sm:$0x1]  ;;  %v219_v45 = vmul.f32 %v326_v24, %v325_v33 }
  0x1d   :  { %s372_s17 = smov 32   ;;  %v175_v31 = vrot.slane %v167_v22, %v396_v5  ;;  %v81_v32 = vmul.f32 %v297_v19, %v296_v28  ;;  %v26_v34 = vmul.f32 %v289_v12, %v25_v29  ;;  %v135_v35 = vld [vmem:[%s276_s0] sm:$0x1]  ;;  %v103_v36 = vmul.f32 %v301_v20, %v300_v30  ;;  %v321_v37 = vld [vmem:[%s276_s0 + $0x36] sm:$0x1]  ;;  %s373_s1 = smov 96  }
  0x1e   :  { %46 = vrot.lane.b32.xlu0 %v45_v21, %s372_s17  ;;  %v154_v38 = vrot.slane %v146_v26, %v396_v5  ;;  %v317_v39 = vld [vmem:[%s276_s0 + $0x24] sm:$0x1]  ;;  %v318_v40 = vld [vmem:[%s144_s10 + $0x12] sm:$0x1]  ;;  %v136_v41 = vmul.f32 %v308_v25, %v135_v35  ;;  %v227_v48 = vrot.slane %v219_v45, %v396_v5  ;;  %s374_s18 = smov [#allocation4]  }
  0x1f   :  { %v322_v42 = vld [vmem:[%s412_s7 + $0x12] sm:$0x1]  ;;  %28 = vst.msk [vmem:[#allocation4] sm:$0x1] %vm27_vm0, %v26_v34  ;;  %104 = vst.msk [vmem:[#allocation4 + $0x2] sm:$0x1] %vm27_vm0, %v103_v36  ;;  %v89_v46 = vrot.slane %v81_v32, %v396_v5  ;;  %v188_v47 = vmul.f32 %v318_v40, %v317_v39 }
  0x20   :  { %v209_v43 = vmul.f32 %v322_v42, %v321_v37  ;;  %176 = vrot.lane.b32.xlu1 %v175_v31, %s371_s14  ;;  %137 = vst.msk [vmem:[#allocation4 + $0x1] sm:$0x1] %vm27_vm0, %v136_v41  ;;  %s238_s19 = sshll.u32 %s374_s18, 4  ;;  %s239_s19 = int_to_ptr.vmem [resolvable:$true] %s238_s19 }
  0x21   :  { %v196_v49 = vrot.slane %v188_v47, %v396_v5  ;;  %s345_s20 = scalar_lea.vmem %s239_s19, 64  ;;  %p350_p6 = scmp.lt.s32.totalorder %s239_s19, %s239_s19 }
  0x22   :  { %155 = vrot.lane.b32.xlu0 %v154_v38, %s372_s17  ;;  %210 = vst.msk [vmem:[#allocation4 + $0x3] sm:$0x1] %vm27_vm0, %v209_v43  ;;  %p346_p5 = scmp.ne.s32.totalorder %s239_s19, %s345_s20  ;;  %p351_p7 = scmp.lt.s32.totalorder %s345_s20, %s345_s20 }
  0x24   :  { %122 = vrot.lane.b32.xlu1 %v121_v44, %s372_s17  ;;  %p352_p8 = por %p351_p7, %p350_p6 }
  0x26   :  { %90 = vrot.lane.b32.xlu0 %v89_v46, %s373_s1  ;;  %p353_p9 = pnand %p352_p8, %p346_p5 }
  0x28   :  { %228 = vrot.lane.b32.xlu1 %v227_v48, %s372_s17 }
  0x2a   :  { %197 = vrot.lane.b32.xlu0 %v196_v49, %s373_s1 }
  0x8e   :  { %v69_v50 = vpop.permute.xlu1 %68 }
  0x90   :  { %v47_v51 = vpop.permute.xlu0 %46 }
  0x91   :  { %50 = vst.msk [vmem:[#allocation4] sm:$0x1] %vm49_vm1, %v47_v51 }
  0x92   :  { %72 = vst.msk [vmem:[#allocation4] sm:$0x1] %vm71_vm2, %v69_v50  ;;  %v177_v52 = vpop.permute.xlu1 %176 }
  0x94   :  { %v156_v53 = vpop.permute.xlu0 %155 }
  0x95   :  { %158 = vst.msk [vmem:[#allocation4 + $0x1] sm:$0x1] %vm49_vm1, %v156_v53 }
  0x96   :  { %179 = vst.msk [vmem:[#allocation4 + $0x1] sm:$0x1] %vm71_vm2, %v177_v52  ;;  %v123_v54 = vpop.permute.xlu1 %122 }
  0x97   :  { %125 = vst.msk [vmem:[#allocation4 + $0x2] sm:$0x1] %vm49_vm1, %v123_v54 }
  0x98   :  { %v91_v55 = vpop.permute.xlu0 %90 }
  0x99   :  { %94 = vst.msk [vmem:[#allocation4] sm:$0x1] %vm93_vm3, %v91_v55 }
  0x9a   :  { %v229_v56 = vpop.permute.xlu1 %228 }
  0x9b   :  { %231 = vst.msk [vmem:[#allocation4 + $0x3] sm:$0x1] %vm49_vm1, %v229_v56 }
  0x9c   :  { %v198_v57 = vpop.permute.xlu0 %197 }
  0x9d   :  { %200 = vst.msk [vmem:[#allocation4 + $0x1] sm:$0x1] %vm93_vm3, %v198_v57 }
  0x9e   :  { %356 = shalt.err (!%p353_p9)
}
  0x9f   :  { %241 = dma.vmem_to_hbm [thread:$0]  %s239_s19, 64, %s448_s2, [#allocation5]  }
  0xa0   :  { %367 = dma.done.wait [#allocation5], 64  }
  0xa1   :  { %368 = vsyncadd [#allocation5], 4294967232 }
  0xa2   :  { %245 = vsyncpa [#allocation5], 1 }

</bundles_post_ra>
